<compile_context>
chip_gen: v6e
topology: v6e:2x2x1
jax: 0.10.0
libtpu: 0.0.40
codegen_flags: <defaults>
</compile_context>

<pallas_src>
import jax
import jax.numpy as jnp
from jax import lax
from jax.experimental import pallas as pl
from jax.experimental.pallas import tpu as pltpu


def actor_kernel(obs_ref, w1_ref, b1_ref, w2_ref, b2_ref, out_ref):
    # Layer 1: (TM, D) @ (D, 32) with bf16 operands, f32 accumulation.
    # The bf16 cast happens on the VMEM tile (no extra HBM traffic) and keeps
    # the MXU to a single pass per matmul.
    obs_b = obs_ref[...].astype(jnp.bfloat16)
    h = jnp.dot(obs_b, w1_ref[...], preferred_element_type=jnp.float32)
    h = jnp.maximum(h + b1_ref[...], 0.0)

    # Layer 2 computed transposed: contract (A, 32) with (TM, 32) on the
    # 32-dim (trans_b pattern) -> (A, TM).  Batch stays on the 128-lane axis,
    # so the store below is lane-dense (no masked vst), and w2 stays in
    # PyTorch-native (A, 32) layout (no in-kernel transpose materialized).
    result_t = lax.dot_general(
        w2_ref[...], h.astype(jnp.bfloat16),
        dimension_numbers=(((1,), (1,)), ((), ())),
        preferred_element_type=jnp.float32,
    ) + b2_ref[...]                          # b2 is (A, 1): broadcast over lanes

    out_ref[...] = jnp.tanh(result_t) * 2.0  # log_means, transposed (A, TM)


def _round_up(x, m):
    return (x + m - 1) // m * m


def actor_forward(obs, w1, b1, w2, b2, log_std, *, tm=2048):
    """Returns (log_means, std, means): LogNormal parameters plus means.

    obs: (B, D_obs) f32 (or bf16)
    w1:  (D_obs, 32) bf16, b1: (1, 32) f32
    w2:  (A, 32) bf16 [PyTorch-native layout], b2: (A, 1) f32
    log_std: (A,) f32
    """
    B, D = obs.shape
    A, H = w2.shape
    assert w1.shape == (D, H) and b1.shape == (1, H) and b2.shape == (A, 1)

    # Batch tiling.  No padding copy of obs: the last grid block may be
    # partial; Pallas masks the out-of-bounds rows/columns.
    lanes = _round_up(B, 128)                      # lane-aligned cover of batch
    tm_eff = min(_round_up(tm, 128), lanes)
    # v7x has 2 TensorCores/chip: keep >= 2 grid steps when the batch allows
    # it so the "parallel" batch axis is actually split across both cores.
    if lanes >= 256 and pl.cdiv(B, tm_eff) < 2:
        tm_eff = max(128, _round_up(pl.cdiv(lanes, 2), 128))
    grid = (pl.cdiv(B, tm_eff),)

    bytes_accessed = (obs.size * obs.dtype.itemsize
                      + w1.size * w1.dtype.itemsize + b1.size * 4
                      + w2.size * w2.dtype.itemsize + b2.size * 4
                      + A * B * 4)

    out = pl.pallas_call(
        actor_kernel,
        out_shape=jax.ShapeDtypeStruct((A, B), jnp.float32),
        grid_spec=pltpu.PrefetchScalarGridSpec(
            num_scalar_prefetch=0,
            grid=grid,
            in_specs=[
                pl.BlockSpec((tm_eff, D), lambda i: (i, 0)),   # obs: streamed
                pl.BlockSpec((D, H), lambda i: (0, 0)),        # w1: resident
                pl.BlockSpec((1, H), lambda i: (0, 0)),        # b1: resident
                pl.BlockSpec((A, H), lambda i: (0, 0)),        # w2: resident
                pl.BlockSpec((A, 1), lambda i: (0, 0)),        # b2: resident
            ],
            out_specs=pl.BlockSpec((A, tm_eff), lambda i: (0, i)),
        ),
        compiler_params=pltpu.CompilerParams(
            dimension_semantics=("parallel",),
            vmem_limit_bytes=(48 * 1024 * 1024 if tm_eff >= 4096 else None),
        ),
        cost_estimate=pl.CostEstimate(
            flops=2 * B * (D * H + H * A),
            transcendentals=B * A,
            bytes_accessed=bytes_accessed,
        ),
    )(obs, w1, b1, w2, b2)

    # out is the lane-dense (A, B) log_means slab.  The transpose back to the
    # module's (B, A) layout and means = exp(...) fuse into one small XLA pass.
    log_means = out.T                      # (B, A)
    means = jnp.exp(log_means)             # (B, A)
    std = jnp.exp(log_std)                 # batch-independent: plain JAX
    # TODO(synk): the LogNormal(log_means, std) distribution object itself has
    # no array equivalent; its parameters are returned instead.
    return log_means, std, means


def init_params(key, dim_observation, dim_action, hidden=32):
    k1, k2, k3, k4 = jax.random.split(key, 4)
    # PyTorch Linear default init: U(-1/sqrt(fan_in), 1/sqrt(fan_in))
    bound1 = 1.0 / jnp.sqrt(dim_observation)
    bound2 = 1.0 / jnp.sqrt(hidden)
    w1 = jax.random.uniform(k1, (dim_observation, hidden), jnp.float32, -bound1, bound1)
    b1 = jax.random.uniform(k2, (1, hidden), jnp.float32, -bound1, bound1)
    # w2 kept in PyTorch-native (out_features, in_features) layout for the
    # transposed (lane-dense) kernel matmul; b2 as a column vector.
    w2 = jax.random.uniform(k3, (dim_action, hidden), jnp.float32, -bound2, bound2)
    b2 = jax.random.uniform(k4, (dim_action, 1), jnp.float32, -bound2, bound2)
    log_std = -0.5 * jnp.ones((dim_action,), jnp.float32)
    # Weights cast to bf16 once (MXU operands); biases stay f32 (added to the
    # f32 accumulator).
    return w1.astype(jnp.bfloat16), b1, w2.astype(jnp.bfloat16), b2, log_std


def reference_forward(obs, w1, b1, w2, b2, log_std):
    # Pure f32 reference of the PyTorch module.
    h = jnp.maximum(obs @ w1.astype(jnp.float32) + b1, 0.0)
    result = h @ w2.astype(jnp.float32).T + b2.T      # w2 is (A, 32)
    log_means = jnp.tanh(result) * 2.0
    return log_means, jnp.exp(log_std), jnp.exp(log_means)


if __name__ == "__main__":
    key = jax.random.PRNGKey(0)
    batch = 300                          # ragged on purpose (exercises masking)
    dim_observation = 16
    dim_action = 8

    pkey, okey = jax.random.split(key)
    w1, b1, w2, b2, log_std = init_params(pkey, dim_observation, dim_action)
    obs = jax.random.normal(okey, (batch, dim_observation), jnp.float32)

    log_means, std, means = actor_forward(obs, w1, b1, w2, b2, log_std)
    jax.block_until_ready((log_means, std, means))

    # Check against pure-JAX f32 reference (bf16 matmul operands => loose tol).
    ref_lm, ref_std, ref_means = reference_forward(obs, w1, b1, w2, b2, log_std)
    assert log_means.shape == (batch, dim_action)
    assert means.shape == (batch, dim_action)
    assert std.shape == (dim_action,)
    assert jnp.allclose(std, ref_std, atol=1e-6), "std mismatch"
    assert jnp.allclose(log_means, ref_lm, atol=5e-2, rtol=5e-2), "log_means mismatch"
    assert jnp.allclose(means, ref_means, atol=5e-2, rtol=5e-2), "means mismatch"

    print("KERNEL_OK")
</pallas_src>

<mosaic_0001>
module attributes {stable_mosaic.version = 11 : i64} {
  func.func @actor_kernel(%arg0: i32, %arg1: memref<256x16xf32, #tpu.memory_space<vmem>>, %arg2: memref<16x32xbf16, #tpu.memory_space<vmem>>, %arg3: memref<1x32xf32, #tpu.memory_space<vmem>>, %arg4: memref<8x32xbf16, #tpu.memory_space<vmem>>, %arg5: memref<8x1xf32, #tpu.memory_space<vmem>>, %arg6: memref<8x256xf32, #tpu.memory_space<vmem>>) attributes {dimension_semantics = [#tpu.dimension_semantics<parallel>], iteration_bounds = array<i64: 2>, scalar_prefetch = 0 : i64, scratch_operands = 0 : i64, tpu.core_type = #tpu.core_type<tc>, window_params = [{transform_indices = @transform_0, window_bounds = array<i64: 256, 16>}, {pipeline_mode = #tpu.pipeline_mode<synchronous>, transform_indices = @transform_1, window_bounds = array<i64: 16, 32>}, {pipeline_mode = #tpu.pipeline_mode<synchronous>, transform_indices = @transform_2, window_bounds = array<i64: 1, 32>}, {pipeline_mode = #tpu.pipeline_mode<synchronous>, transform_indices = @transform_3, window_bounds = array<i64: 8, 32>}, {pipeline_mode = #tpu.pipeline_mode<synchronous>, transform_indices = @transform_4, window_bounds = array<i64: 8, 1>}, {transform_indices = @transform_5, window_bounds = array<i64: 8, 256>}]} {
    %c0 = arith.constant 0 : index
    %c0_0 = arith.constant 0 : index
    %0 = vector.load %arg1[%c0, %c0_0] : memref<256x16xf32, #tpu.memory_space<vmem>>, vector<256x16xf32>
    %1 = arith.truncf %0 : vector<256x16xf32> to vector<256x16xbf16>
    %c0_1 = arith.constant 0 : index
    %c0_2 = arith.constant 0 : index
    %2 = vector.load %arg2[%c0_1, %c0_2] : memref<16x32xbf16, #tpu.memory_space<vmem>>, vector<16x32xbf16>
    %cst = arith.constant dense<0.000000e+00> : vector<256x32xf32>
    %3 = tpu.matmul %1, %2, %cst {dimension_numbers = #tpu.dot_dimension_numbers<[1], [0], [0], [1], [0, 0, 1, 1], [], []>} : vector<256x16xbf16>, vector<16x32xbf16>, vector<256x32xf32> -> vector<256x32xf32>
    %c0_3 = arith.constant 0 : index
    %c0_4 = arith.constant 0 : index
    %4 = vector.load %arg3[%c0_3, %c0_4] : memref<1x32xf32, #tpu.memory_space<vmem>>, vector<1x32xf32>
    %5 = vector.broadcast %4 : vector<1x32xf32> to vector<256x32xf32>
    %6 = arith.addf %3, %5 : vector<256x32xf32>
    %cst_5 = arith.constant 0.000000e+00 : f32
    %7 = vector.broadcast %cst_5 : f32 to vector<256x32xf32>
    %8 = arith.maximumf %6, %7 : vector<256x32xf32>
    %c0_6 = arith.constant 0 : index
    %c0_7 = arith.constant 0 : index
    %9 = vector.load %arg4[%c0_6, %c0_7] : memref<8x32xbf16, #tpu.memory_space<vmem>>, vector<8x32xbf16>
    %10 = arith.truncf %8 : vector<256x32xf32> to vector<256x32xbf16>
    %cst_8 = arith.constant dense<0.000000e+00> : vector<8x256xf32>
    %11 = tpu.matmul %9, %10, %cst_8 {dimension_numbers = #tpu.dot_dimension_numbers<[1], [1], [0], [0], [0, 0, 1, 0], [], []>} : vector<8x32xbf16>, vector<256x32xbf16>, vector<8x256xf32> -> vector<8x256xf32>
    %c0_9 = arith.constant 0 : index
    %c0_10 = arith.constant 0 : index
    %12 = vector.load %arg5[%c0_9, %c0_10] : memref<8x1xf32, #tpu.memory_space<vmem>>, vector<8x1xf32>
    %13 = vector.broadcast %12 : vector<8x1xf32> to vector<8x256xf32>
    %14 = arith.addf %11, %13 : vector<8x256xf32>
    %15 = math.tanh %14 : vector<8x256xf32>
    %cst_11 = arith.constant 2.000000e+00 : f32
    %16 = vector.broadcast %cst_11 : f32 to vector<8x256xf32>
    %17 = arith.mulf %15, %16 : vector<8x256xf32>
    %c0_12 = arith.constant 0 : index
    %c0_13 = arith.constant 0 : index
    %18 = vector.load %arg6[%c0_12, %c0_13] : memref<8x256xf32, #tpu.memory_space<vmem>>, vector<8x256xf32>
    tpu.vector_store %arg6[%c0_12, %c0_13], %17 {strides = array<i32>} : memref<8x256xf32, #tpu.memory_space<vmem>>, vector<8x256xf32>,
    return
  }
  func.func @transform_0(%arg0: i32) -> (i32, i32) {
    %c0_i32 = arith.constant 0 : i32
    %c0_i32_0 = arith.constant 0 : i32
    return %arg0, %c0_i32 : i32, i32
  }
  func.func @transform_1(%arg0: i32) -> (i32, i32) {
    %c0_i32 = arith.constant 0 : i32
    %c0_i32_0 = arith.constant 0 : i32
    %c0_i32_1 = arith.constant 0 : i32
    return %c0_i32, %c0_i32_0 : i32, i32
  }
  func.func @transform_2(%arg0: i32) -> (i32, i32) {
    %c0_i32 = arith.constant 0 : i32
    %c0_i32_0 = arith.constant 0 : i32
    %c0_i32_1 = arith.constant 0 : i32
    return %c0_i32, %c0_i32_0 : i32, i32
  }
  func.func @transform_3(%arg0: i32) -> (i32, i32) {
    %c0_i32 = arith.constant 0 : i32
    %c0_i32_0 = arith.constant 0 : i32
    %c0_i32_1 = arith.constant 0 : i32
    return %c0_i32, %c0_i32_0 : i32, i32
  }
  func.func @transform_4(%arg0: i32) -> (i32, i32) {
    %c0_i32 = arith.constant 0 : i32
    %c0_i32_0 = arith.constant 0 : i32
    %c0_i32_1 = arith.constant 0 : i32
    return %c0_i32, %c0_i32_0 : i32, i32
  }
  func.func @transform_5(%arg0: i32) -> (i32, i32) {
    %c0_i32 = arith.constant 0 : i32
    %c0_i32_0 = arith.constant 0 : i32
    return %c0_i32, %arg0 : i32, i32
  }
}

</mosaic_0001>

<bundles_post_ra>
// kernel: tpu_custom_call.1
= control target key start
LH: loop header
LB: loop body
LE: loop exit
PB: predicated region body
PF: predicated region fallthrough
CT: control target
= control target key end

     0   :  { %10 = vsyncpa [#allocation3], 0  ;;  %s1264_s0 = inlined_call_operand.vmem [shape: f32[300,16], index: 0, kind: input, shape index: {}]   ;;  %s1265_s1 = inlined_call_operand.vmem [shape: bf16[16,32], index: 1, kind: input, shape index: {}]   ;;  %s1266_s2 = inlined_call_operand.vmem [shape: f32[1,32], index: 2, kind: input, shape index: {}]   ;;  %s1267_s3 = inlined_call_operand.vmem [shape: bf16[8,32], index: 3, kind: input, shape index: {}]   ;;  %s1268_s4 = inlined_call_operand.vmem [shape: f32[8,1], index: 4, kind: input, shape index: {}]   ;;  %s1269_s5 = inlined_call_operand.hbm [shape: f32[8,300], index: 5, kind: output, shape index: {}]  }
   0x1   :  { %12 = vsyncpa [#allocation3 + $0x1], 0  ;;  %s1010_s18 = smov 0   ;;  %s1012_s19 = smov 0  }
   0x2   :  { %s1014_s20 = smov 0   ;;  %s1016_s21 = smov 0  }
   0x3 LB: > { %s1031_s22 = sadd.s32 4294967295, %s976_s21   ;;  %s758_s23 = sadd.s32 4294967294, %s976_s21   ;;  %s976_s21 = sphi %s1016_s21, %s1275_s21   ;;  %s972_s20 = sphi %s1014_s20, %s1274_s20   ;;  %s968_s19 = sphi %s1012_s19, %s1273_s19   ;;  %s964_s18 = sphi %s1010_s18, %s1272_s18  }
   0x4   : > { %s1035_s24 = sadd.s32 1, %s976_s21   ;;  %s135_s25 = sadd.s32 1, %s972_s20 }
   0x5   : > { %s132_s26 = ssub.s32 %s976_s21, %s1035_s24  ;;  %p145_p0 = scmp.ne.s32.totalorder %s972_s20, %s968_s19 }
   0x6   : > { %p133_p1 = scmp.eq.s32.totalorder %s132_s26, 0  ;;  %p146_p2 = scmp.eq.s32.totalorder %s1031_s22, 1 }
   0x7   : > { %p151_p3 = scmp.ne.s32.totalorder %s968_s19, %s964_s18  ;;  %p152_p4 = scmp.eq.s32.totalorder %s758_s23, 1 }
   0x8   : > { %s1046_s27 = scalar_select %p133_p1, %s972_s20, %s135_s25  }
   0x9   : > { %p1048_p5 = por %p146_p2, %p145_p0  ;;  %p1052_p6 = por %p152_p4, %p151_p3 }
   0xa   : > { %p761_p7 = scmp.ge.s32.totalorder %s976_s21, 1  ;;  %p199_p8 = scmp.lt.s32.totalorder %s976_s21, 3 }
   0xc   : > { %p200_p9 = pnand %p761_p7, %p199_p8 }
   0xd   : > { %s763_s7 = sshll.u32 (!%p200_p9), %s1031_s22, 5  ;;  %s228_s23 = sand.u32 (!%p200_p9), 1, %s968_s19  }
   0xe   : > { %203 = sbr.rel (%p200_p9) target bundleno = 589 (0x24d), region = 40  ;;  %p236_p10 = scmp.lt.s32.totalorder (!%p200_p9), %s763_s7, 37 }
   0xf   : > { %s762_s25 = sshll.u32 (!%p200_p9), %s228_s23, 4  ;;  %s1217_s30 = scalar_lea.sflag (!%p200_p9), [#allocation3], %s228_s23 }
  0x10   : > { %s230_s26 = scalar_lea.vmem (!%p200_p9), [#allocation2], %s762_s25 }
  0x13   : > { %v911_v0 = vld [vmem:[%s1265_s1] sm:$0xff]   ;;  %s1277_s7 = smov (!%p236_p10, %s763_s7), 37  ;;  %vm314_vm0 = vcmask 130048   ;;  %vm579_vm1 = vcmask 261120   ;;  %v978_v56 = vmov 0   ;;  %s785_s6 = sshll.u32 (%p1048_p5), %s1031_s22, 1 }
  0x14   : > { %829 = vmatprep.subr.bf16.mxu0 %v911_v0  ;;  %s764_s8 = sshll.u32 %s1277_s7, 3  ;;  %v1118_v49 = vld [vmem:[%s1267_s3] sm:$0xf]  ;;  %910 = vset.pattern.permute.xlu0 %v978_v56  ;;  %s687_s7 = ssub.s32 (%p1048_p5), 3, %s785_s6 }
  0x15   : > { %830 = vmatpush3.bf16.msra.mxu0 %v911_v0  ;;  %s1065_s11 = scalar_lea.vmem %s1264_s0, %s764_s8  ;;  %827 = vmatprep.mubr.msk.bf16.mxu1 %vm579_vm1, %v1118_v49  ;;  %v1125_v51 = vld [vmem:[%s1266_s2] ss:$0 sm:$0xff]  ;;  %p688_p11 = scmp.lt.s32.totalorder (%p1048_p5), %s687_s7, 2 }
  0x16   : > { %v251_v1 = vld [vmem:[%s1065_s11] sm:$0xff]  ;;  %v252_v2 = vld [vmem:[%s1065_s11 + $0x8] sm:$0xff]  ;;  %v253_v3 = vld [vmem:[%s1065_s11 + $0x10] sm:$0xff] }
  0x17   : > { %v283_v4 = vpack.c.bf16 %v252_v2, %v251_v1  ;;  %v254_v5 = vld [vmem:[%s1065_s11 + $0x18] sm:$0xff]  ;;  %v255_v6 = vld [vmem:[%s1065_s11 + $0x20] sm:$0xff]  ;;  %v256_v7 = vld [vmem:[%s1065_s11 + $0x28] sm:$0xff] }
  0x18   : > { %v284_v8 = vpack.c.bf16 %v254_v5, %v253_v3  ;;  %v285_v9 = vpack.c.bf16 %v256_v7, %v255_v6  ;;  %v257_v10 = vld [vmem:[%s1065_s11 + $0x30] sm:$0xff]  ;;  %v258_v11 = vld [vmem:[%s1065_s11 + $0x38] sm:$0xff]  ;;  %v259_v12 = vld [vmem:[%s1065_s11 + $0x40] sm:$0xff] }
  0x19   : > { %831 = vmatprep.mubr.msk.bf16.mxu0 %vm314_vm0, %v283_v4  ;;  %v260_v13 = vld [vmem:[%s1065_s11 + $0x48] sm:$0xff]  ;;  %v286_v14 = vpack.c.bf16 %v258_v11, %v257_v10  ;;  %v261_v16 = vld [vmem:[%s1065_s11 + $0x50] sm:$0xff]  ;;  %v262_v17 = vld [vmem:[%s1065_s11 + $0x58] sm:$0xff] }
  0x1a   : > { %832 = vmatmul.mubr.msk.bf16.vlgmr.msra.gmra.mxu0 %vm314_vm0, %v284_v8  ;;  %v287_v15 = vpack.c.bf16 %v260_v13, %v259_v12  ;;  %v263_v18 = vld [vmem:[%s1065_s11 + $0x60] sm:$0xff]  ;;  %v264_v19 = vld [vmem:[%s1065_s11 + $0x68] sm:$0xff]  ;;  %v288_v20 = vpack.c.bf16 %v262_v17, %v261_v16  ;;  %v265_v22 = vld [vmem:[%s1065_s11 + $0x70] sm:$0xff] }
  0x1b   : > { %835 = vmatprep.mubr.msk.bf16.mxu0 %vm314_vm0, %v285_v9  ;;  %v289_v21 = vpack.c.bf16 %v264_v19, %v263_v18  ;;  %v266_v23 = vld [vmem:[%s1065_s11 + $0x78] sm:$0xff]  ;;  %v267_v24 = vld [vmem:[%s1065_s11 + $0x80] sm:$0xff]  ;;  %v268_v25 = vld [vmem:[%s1065_s11 + $0x88] sm:$0xff] }
  0x1c   : > { %v290_v26 = vpack.c.bf16 %v266_v23, %v265_v22  ;;  %v291_v27 = vpack.c.bf16 %v268_v25, %v267_v24  ;;  %v269_v28 = vld [vmem:[%s1065_s11 + $0x90] sm:$0xff]  ;;  %v270_v29 = vld [vmem:[%s1065_s11 + $0x98] sm:$0xff]  ;;  %v271_v30 = vld [vmem:[%s1065_s11 + $0xa0] sm:$0xff] }
  0x1d   : > { %v272_v31 = vld [vmem:[%s1065_s11 + $0xa8] sm:$0xff]  ;;  %v292_v32 = vpack.c.bf16 %v270_v29, %v269_v28  ;;  %v273_v34 = vld [vmem:[%s1065_s11 + $0xb0] sm:$0xff]  ;;  %v274_v35 = vld [vmem:[%s1065_s11 + $0xb8] sm:$0xff] }
  0x1e   : > { %v293_v33 = vpack.c.bf16 %v272_v31, %v271_v30  ;;  %v275_v36 = vld [vmem:[%s1065_s11 + $0xc0] sm:$0xff]  ;;  %v276_v37 = vld [vmem:[%s1065_s11 + $0xc8] sm:$0xff]  ;;  %v294_v38 = vpack.c.bf16 %v274_v35, %v273_v34  ;;  %v277_v40 = vld [vmem:[%s1065_s11 + $0xd0] sm:$0xff] }
  0x1f   : > { %v295_v39 = vpack.c.bf16 %v276_v37, %v275_v36  ;;  %v278_v41 = vld [vmem:[%s1065_s11 + $0xd8] sm:$0xff]  ;;  %v279_v42 = vld [vmem:[%s1065_s11 + $0xe0] sm:$0xff]  ;;  %v280_v43 = vld [vmem:[%s1065_s11 + $0xe8] sm:$0xff] }
  0x20   : > { %v296_v44 = vpack.c.bf16 %v278_v41, %v277_v40  ;;  %v297_v45 = vpack.c.bf16 %v280_v43, %v279_v42  ;;  %v281_v46 = vld [vmem:[%s1065_s11 + $0xf0] sm:$0xff]  ;;  %v282_v47 = vld [vmem:[%s1065_s11 + $0xf8] sm:$0xff]  ;;  %v573_v54 = vld [vmem:[%s1268_s4] sm:$0xff] }
  0x21   : > { %v298_v48 = vpack.c.bf16 %v282_v47, %v281_v46  ;;  %576 = vperm.xlu0 %910, %v573_v54  }
  0x22   : > { %836 = vmatmul.mubr.msk.bf16.gmra.mxu0 %vm314_vm0, %v286_v14 }
  0x23   : > { %839 = vmatprep.mubr.msk.bf16.mxu0 %vm314_vm0, %v287_v15 }
  0x2a   : > { %840 = vmatmul.mubr.msk.bf16.gmra.mxu0 %vm314_vm0, %v288_v20 }
  0x2b   : > { %843 = vmatprep.mubr.msk.bf16.mxu0 %vm314_vm0, %v289_v21 }
  0x32   : > { %844 = vmatmul.mubr.msk.bf16.gmra.mxu0 %vm314_vm0, %v290_v26 }
  0x33   : > { %847 = vmatprep.mubr.msk.bf16.mxu0 %vm314_vm0, %v291_v27 }
  0x3a   : > { %848 = vmatmul.mubr.msk.bf16.gmra.mxu0 %vm314_vm0, %v292_v32 }
  0x3b   : > { %851 = vmatprep.mubr.msk.bf16.mxu0 %vm314_vm0, %v293_v33 }
  0x42   : > { %852 = vmatmul.mubr.msk.bf16.gmra.mxu0 %vm314_vm0, %v294_v38 }
  0x43   : > { %855 = vmatprep.mubr.msk.bf16.mxu0 %vm314_vm0, %v295_v39 }
  0x4a   : > { %856 = vmatmul.mubr.msk.bf16.gmra.mxu0 %vm314_vm0, %v296_v44 }
  0x4b   : > { %859 = vmatprep.mubr.msk.bf16.mxu0 %vm314_vm0, %v297_v45 }
  0x52   : > { %860 = vmatmul.mubr.msk.bf16.gmra.mxu0 %vm314_vm0, %v298_v48 }
  0xda   : > { %v833_v50 = vpop.f32.mrf.mxu0 }
  0xdb   : > { %v406_v53 = vadd.f32 %v833_v50, %v1125_v51 }
  0xdc   : > { %v397_v52 = vpop.f32.mrf.mxu0 }
  0xdd   : > { %v398_v57 = vadd.f32 %v1125_v51, %v397_v52  ;;  %v526_v60 = vmax.f32 %v406_v53, 0.0 }
  0xde   : > { %v834_v55 = vpop.f32.mrf.mxu0 }
  0xdf   : > { %v409_v58 = vadd.f32 %v834_v55, %v1125_v51  ;;  %v524_v0 = vmax.f32 %v398_v57, 0.0 }
  0xe0   : > { %v400_v59 = vpop.f32.mrf.mxu0 }
  0xe1   : > { %v527_v61 = vmax.f32 %v409_v58, 0.0  ;;  %v401_v62 = vadd.f32 %v1125_v51, %v400_v59 }
  0xe2   : > { %v837_v63 = vpop.f32.mrf.mxu0 }
  0xe3   : > { %v1134_v1 = vpack.c.bf16 %v527_v61, %v526_v60  ;;  %v525_v2 = vmax.f32 %v401_v62, 0.0  ;;  %v422_v5 = vadd.f32 %v837_v63, %v1125_v51 }
  0xe4   : > { %v413_v3 = vpop.f32.mrf.mxu0 }
  0xe5   : > { %v1136_v4 = vpack.c.bf16 %v525_v2, %v524_v0  ;;  %v414_v7 = vadd.f32 %v1125_v51, %v413_v3  ;;  %v530_v10 = vmax.f32 %v422_v5, 0.0 }
  0xe6   : > { %v838_v6 = vpop.f32.mrf.mxu0 }
  0xe7   : > { %v425_v8 = vadd.f32 %v838_v6, %v1125_v51  ;;  %v528_v14 = vmax.f32 %v414_v7, 0.0 }
  0xe8   : > { %v416_v9 = vpop.f32.mrf.mxu0 }
  0xe9   : > { %v531_v11 = vmax.f32 %v425_v8, 0.0  ;;  %v417_v12 = vadd.f32 %v1125_v51, %v416_v9 }
  0xea   : > { %v1142_v13 = vpop.f32.mrf.mxu0 }
  0xeb   : > { %v1144_v15 = vpack.c.bf16 %v531_v11, %v530_v10  ;;  %v529_v16 = vmax.f32 %v417_v12, 0.0 }
  0xec   : > { %v1146_v17 = vpop.f32.mrf.mxu0 }
  0xed   : > { %v1148_v18 = vpack.c.bf16 %v529_v16, %v528_v14 }
  0xee   : > { %v842_v19 = vpop.f32.mrf.mxu0 }
  0xef   : > { %v441_v14 = vadd.f32 %v842_v19, %v1125_v51 }
  0xf0   : > { %v1150_v20 = vpop.f32.mrf.mxu0 }
  0xf1   : > { %v433_v19 = vadd.f32 %v1125_v51, %v1150_v20 }
  0xf2   : > { %v845_v21 = vpop.f32.mrf.mxu0 }
  0xf3   : > { %v454_v50 = vadd.f32 %v845_v21, %v1125_v51 }
  0xf4   : > { %v445_v22 = vpop.f32.mrf.mxu0 }
  0xf5   : > { %v538_v56 = vmax.f32 %v454_v50, 0.0  ;;  %v446_v2 = vadd.f32 %v1125_v51, %v445_v22  ;;  %v438_v22 = vadd.f32 %v1142_v13, %v1125_v51  ;;  %v430_v13 = vadd.f32 %v1125_v51, %v1146_v17 }
  0xf6   : > { %v846_v23 = vpop.f32.mrf.mxu0 }
  0xf7   : > { %v457_v47 = vadd.f32 %v846_v23, %v1125_v51  ;;  %v536_v11 = vmax.f32 %v446_v2, 0.0 }
  0xf8   : > { %v448_v24 = vpop.f32.mrf.mxu0 }
  0xf9   : > { %v539_v53 = vmax.f32 %v457_v47, 0.0  ;;  %v449_v59 = vadd.f32 %v1125_v51, %v448_v24  ;;  %v535_v24 = vmax.f32 %v441_v14, 0.0 }
  0xfa   : > { %v849_v25 = vpop.f32.mrf.mxu0 }
  0xfb   : > { %v470_v27 = vadd.f32 %v849_v25, %v1125_v51  ;;  %v564_v0 = vpack.c.bf16 %v539_v53, %v538_v56  ;;  %v537_v7 = vmax.f32 %v449_v59, 0.0  ;;  %v593_v53 = vsel %vm579_vm1, %v1144_v15, 0 }
  0xfc   : > { %v461_v26 = vpop.f32.mrf.mxu0  ;;  %v584_v15 = vsel %vm579_vm1, %v1136_v4, 0 }
  0xfd   : > { %v462_v29 = vadd.f32 %v1125_v51, %v461_v26  ;;  %v542_v32 = vmax.f32 %v470_v27, 0.0  ;;  %v605_v10 = vsel %vm579_vm1, %v564_v0, 0  ;;  %v563_v16 = vpack.c.bf16 %v537_v7, %v536_v11 }
  0xfe   : > { %v850_v28 = vpop.f32.mrf.mxu0 }
  0xff   : > { %v473_v30 = vadd.f32 %v850_v28, %v1125_v51  ;;  %v540_v36 = vmax.f32 %v462_v29, 0.0  ;;  %v602_v27 = vsel %vm579_vm1, %v563_v16, 0  ;;  %v534_v28 = vmax.f32 %v438_v22, 0.0 }
 0x100   : > { %v464_v31 = vpop.f32.mrf.mxu0 }
 0x101   : > { %v543_v33 = vmax.f32 %v473_v30, 0.0  ;;  %v465_v34 = vadd.f32 %v1125_v51, %v464_v31  ;;  %v562_v30 = vpack.c.bf16 %v535_v24, %v534_v28 }
 0x102   : > { %v1156_v35 = vpop.f32.mrf.mxu0 }
 0x103   : > { %v1158_v37 = vpack.c.bf16 %v543_v33, %v542_v32  ;;  %v541_v38 = vmax.f32 %v465_v34, 0.0  ;;  %v533_v33 = vmax.f32 %v433_v19, 0.0 }
 0x104   : > { %v1160_v39 = vpop.f32.mrf.mxu0 }
 0x105   : > { %v1162_v40 = vpack.c.bf16 %v541_v38, %v540_v36  ;;  %v599_v38 = vsel %vm579_vm1, %v562_v30, 0 }
 0x106   : > { %v854_v41 = vpop.f32.mrf.mxu0 }
 0x107   : > { %v489_v34 = vadd.f32 %v854_v41, %v1125_v51  ;;  %v478_v41 = vadd.f32 %v1125_v51, %v1160_v39 }
 0x108   : > { %v1164_v42 = vpop.f32.mrf.mxu0 }
 0x109   : > { %v547_v20 = vmax.f32 %v489_v34, 0.0  ;;  %v481_v17 = vadd.f32 %v1125_v51, %v1164_v42  ;;  %v590_v42 = vsel %vm579_vm1, %v1148_v18, 0  ;;  %v577_v18 = vpop.permute.xlu0 %576 }
 0x10a   : > { %v857_v43 = vpop.f32.mrf.mxu0 }
 0x10b   : > { %v502_v12 = vadd.f32 %v857_v43, %v1125_v51  ;;  %v532_v43 = vmax.f32 %v430_v13, 0.0  ;;  %v545_v50 = vmax.f32 %v481_v17, 0.0 }
 0x10c   : > { %v493_v44 = vpop.f32.mrf.mxu0 }
 0x10d   : > { %v550_v23 = vmax.f32 %v502_v12, 0.0  ;;  %v494_v29 = vadd.f32 %v1125_v51, %v493_v44  ;;  %v486_v44 = vadd.f32 %v1156_v35, %v1125_v51  ;;  %v544_v35 = vmax.f32 %v478_v41, 0.0 }
 0x10e   : > { %v858_v45 = vpop.f32.mrf.mxu0 }
 0x10f   : > { %v505_v8 = vadd.f32 %v858_v45, %v1125_v51  ;;  %v548_v32 = vmax.f32 %v494_v29, 0.0  ;;  %v561_v45 = vpack.c.bf16 %v533_v33, %v532_v43 }
 0x110   : > { %v496_v46 = vpop.f32.mrf.mxu0 }
 0x111   : > { %v551_v21 = vmax.f32 %v505_v8, 0.0  ;;  %v497_v26 = vadd.f32 %v1125_v51, %v496_v46  ;;  %v546_v46 = vmax.f32 %v486_v44, 0.0 }
 0x112   : > { %v861_v48 = vpop.f32.mrf.mxu0 }
 0x113   : > { %v518_v54 = vadd.f32 %v861_v48, %v1125_v51  ;;  %v570_v25 = vpack.c.bf16 %v551_v21, %v550_v23  ;;  %v549_v31 = vmax.f32 %v497_v26, 0.0  ;;  %v568_v47 = vpack.c.bf16 %v547_v20, %v546_v46 }
 0x114   : > { %v509_v52 = vpop.f32.mrf.mxu0  ;;  %v596_v48 = vsel %vm579_vm1, %v561_v45, 0 }
 0x115   : > { %v510_v57 = vadd.f32 %v1125_v51, %v509_v52  ;;  %v554_v61 = vmax.f32 %v518_v54, 0.0  ;;  %v569_v36 = vpack.c.bf16 %v549_v31, %v548_v32  ;;  %v567_v52 = vpack.c.bf16 %v545_v50, %v544_v35 }
 0x116   : > { %v862_v55 = vpop.f32.mrf.mxu0 }
 0x117   : > { %v521_v58 = vadd.f32 %v862_v55, %v1125_v51  ;;  %v552_v3 = vmax.f32 %v510_v57, 0.0 }
 0x118   : > { %v512_v60 = vpop.f32.mrf.mxu0 }
 0x119   : > { %v555_v62 = vmax.f32 %v521_v58, 0.0  ;;  %v513_v63 = vadd.f32 %v1125_v51, %v512_v60  ;;  %v587_v51 = vsel %vm579_vm1, %v1134_v1, 0 }
 0x11b   : > { %v553_v5 = vmax.f32 %v513_v63, 0.0  ;;  %v572_v6 = vpack.c.bf16 %v555_v62, %v554_v61 }
 0x11d   : > { %v571_v9 = vpack.c.bf16 %v553_v5, %v552_v3  ;;  %863 = vmatprep.subr.msk.bf16.mxu1 %vm579_vm1, %v572_v6 }
 0x11e   : > { %812 = vmatpush3.bf16.xpose.msra.mxu1 %v605_v10 }
 0x11f   : > { %864 = vmatprep.subr.msk.bf16.mxu1 %vm579_vm1, %v571_v9 }
 0x126   : > { %814 = vmatpush3.bf16.xpose.msra.mxu1 %v602_v27 }
 0x127   : > { %865 = vmatprep.subr.msk.bf16.mxu1 %vm579_vm1, %v570_v25 }
 0x12e   : > { %816 = vmatpush3.bf16.xpose.msra.mxu1 %v599_v38 }
 0x12f   : > { %866 = vmatprep.subr.msk.bf16.mxu1 %vm579_vm1, %v569_v36 }
 0x136   : > { %818 = vmatpush3.bf16.xpose.msra.mxu1 %v596_v48 }
 0x137   : > { %867 = vmatprep.subr.msk.bf16.mxu1 %vm579_vm1, %v568_v47 }
 0x13e   : > { %820 = vmatpush3.bf16.xpose.msra.mxu1 %v593_v53 }
 0x13f   : > { %868 = vmatprep.subr.msk.bf16.mxu1 %vm579_vm1, %v567_v52 }
 0x146   : > { %822 = vmatpush3.bf16.xpose.msra.mxu1 %v590_v42 }
 0x147   : > { %869 = vmatprep.subr.msk.bf16.mxu1 %vm579_vm1, %v1158_v37 }
 0x14e   : > { %824 = vmatpush3.bf16.xpose.msra.mxu1 %v587_v51 }
 0x14f   : > { %870 = vmatprep.subr.msk.bf16.mxu1 %vm579_vm1, %v1162_v40 }
 0x156   : > { %826 = vmatpush3.bf16.xpose.msra.mxu1 %v584_v15 }
 0x15d   : > { %828 = vmatmul.mubr.msk.bf16.vlgmr.msra.gmra.mxu1 %vm579_vm1, %v1118_v49 }
 0x21d   : > { %v665_v39 = vpop.f32.mrf.mxu1 }
 0x21e   : > { %v666_v54 = vadd.f32 %v665_v39, %v577_v18 }
 0x21f   : > { %v667_v55 = vpop.f32.mrf.mxu1 }
 0x220   : > { %912 = vtanh.f32 %v666_v54  ;;  %v668_v37 = vadd.f32 %v667_v55, %v577_v18 }
 0x221   : > { %v669_v56 = vpop.f32.mrf.mxu1 }
 0x222   : > { %914 = vtanh.f32 %v668_v37 }
 0x223   : > { %v670_v1 = vpop.f32.mrf.mxu1 }
 0x22d   : > { %v913_v57 = vpop.eup %912 }
 0x22e   : > { %v674_v40 = vmul.f32 2.0, %v913_v57  ;;  %685 = sbr.rel (!%p1048_p5) target bundleno = 589 (0x24d), region = 44 }
 0x22f   : > { %v915_v58 = vpop.eup %914 }
 0x230   : > { %676 = vst [vmem:[%s230_s26] sm:$0xff] %v674_v40  ;;  %v675_v4 = vmul.f32 2.0, %v915_v58 }
 0x232   : > { %677 = vst [vmem:[%s230_s26 + $0x8] sm:$0xff] %v675_v4 }
 0x233   : > { %s1279_s7 = smov (!%p688_p11, %s687_s7), 2 }
 0x234   : > { %s1222_s8 = sshll.u32 %s1279_s7, 7 }
 0x235   : > { %s692_s9 = ssub.s32 256, %s1222_s8 }
 0x236   : > { %693 = vsyncadd %s1217_s30, %s692_s9  ;;  %p787_p12 = scmp.ne.s32.totalorder %s1222_s8, 0  ;;  %s793_s10 = sshll.u32 %s1031_s22, 8 }
 0x237   : > { %s696_s12 = scalar_lea.hbm %s1269_s5, %s793_s10  ;;  %s699_s13 = sshll.u32 %s230_s26, 4  ;;  %s700_s13 = int_to_ptr.vmem [resolvable:$true] %s699_s13 }
 0x238   : > { %s916_s14 = scalar_lea.vmem %s700_s13, %s1222_s8  ;;  %s979_s15 = smov [#allocation2]  }
 0x239   : > { %p917_p13 = scmp.ne.s32.totalorder %s700_s13, %s916_s14  ;;  %s920_s16 = sshll.u32 %s979_s15, 4  ;;  %s921_s16 = int_to_ptr.vmem [resolvable:$false] %s920_s16 }
 0x23a   : > { %s922_s17 = scalar_lea.vmem %s921_s16, 512  ;;  %p923_p2 = scmp.lt.s32.totalorder %s700_s13, %s921_s16 }
 0x23b   : > { %p918_p0 = pnand %p917_p13, %p787_p12  ;;  %p924_p3 = scmp.lt.s32.totalorder %s922_s17, %s916_s14 }
 0x23d   : > { %p919_p1 = pneg %p918_p0  ;;  %p925_p4 = por %p924_p3, %p923_p2 }
 0x23f   : > { %p926_p5 = pnand %p925_p4, %p919_p1 }
 0x241   : > { %929 = shalt.err (!%p926_p5)
}
 0x242   : > { %s930_s22 = scalar_lea.hbm %s696_s12, %s1222_s8  ;;  %s934_s26 = scalar_lea.hbm %s1269_s5, 384 }
 0x243   : > { %p931_p7 = scmp.ne.s32.totalorder %s696_s12, %s930_s22  ;;  %p935_p10 = scmp.lt.s32.totalorder %s696_s12, %s1269_s5 }
 0x244   : > { %p936_p11 = scmp.lt.s32.totalorder %s934_s26, %s930_s22 }
 0x245   : > { %p932_p8 = pnand %p931_p7, %p787_p12 }
 0x246   : > { %p937_p13 = por %p936_p11, %p935_p10 }
 0x247   : > { %p933_p9 = pneg %p932_p8 }
 0x249   : > { %p938_p0 = pnand %p937_p13, %p933_p9 }
 0x24b   : > { %941 = shalt.err (!%p938_p0)
}
 0x24c   : > { %702 = dma.vmem_to_hbm [thread:$0]  (%p787_p12), %s700_s13, %s1222_s8, %s696_s12, %s1217_s30  }
 0x24d PF: > { %p876_p1 = scmp.ge.s32.totalorder %s976_s21, 2  ;;  %s711_s9 = sand.u32 1, %s964_s18  }
 0x24e   : > { %s712_s10 = scalar_lea.sflag [#allocation3], %s711_s9 }
 0x24f   : > { %p873_p2 = pnand %p876_p1, %p1052_p6 }
 0x251   : > { %p874_p3 = pneg %p873_p2 }
 0x253   : > { %959 = dma.done.wait (%p874_p3), %s712_s10, 256  }
 0x254   : > { %961 = vsyncadd (%p874_p3), %s712_s10, 4294967040  ;;  %p15_p4 = scmp.ge.s32.totalorder %s1035_s24, 4   ;;  %s1272_s18 = smov %s968_s19 }
 0x255   : > { %s1273_s19 = smov %s972_s20  ;;  %s1274_s20 = smov %s1046_s27 }
 0x256   : > { %s1275_s21 = smov %s1035_s24  ;;  %17 = sbr.rel (!%p15_p4) target bundleno = 3 (0x3), region = 75 }
 0x25b   :  { %717 = vsyncpa [#allocation3], 1 }
 0x25c   :  { %719 = vsyncpa [#allocation3 + $0x1], 1 }

</bundles_post_ra>
